<compile_context>
chip_gen: v6e
topology: v6e:2x2x1
jax: 0.10.0
libtpu: 0.0.40
codegen_flags: <defaults>
</compile_context>

<pallas_src>
import math

import jax
import jax.numpy as jnp
from jax.experimental import pallas as pl
from jax.experimental.pallas import tpu as pltpu

LANE = 128  # TPU lane width (last dim)
SUB = 8     # TPU sublane width (second-to-last dim)


def _round_up(n, m):
    return ((n + m - 1) // m) * m


def _cdiv(a, b):
    return (a + b - 1) // b


def _pad2(a, rows, cols, dtype=jnp.float32):
    a = jnp.asarray(a, jnp.float32)
    r, c = a.shape
    return jnp.pad(a, ((0, rows - r), (0, cols - c))).astype(dtype)


# ---------------------------------------------------------------------------
# Kernel 1: per-edge message MLP + fused segment-sum aggregation.
# Grid = (edge_partitions ["parallel"], edge_tiles_per_partition ["arbitrary"]).
#   * fc1 hoist: h_s = x @ W1s and h_r = x @ W1r computed once per partition
#     (first edge step), kept in bf16 VMEM scratch.
#   * Gather / scatter-add use one-hot selectors built in registers from the
#     int32 edge lists (no (E,N) matrices ever touch HBM).
#   * Only the small per-partition aggregate (P, NR, MP) goes back to HBM.
# ---------------------------------------------------------------------------
def _edge_msg_agg_kernel(send_ref, recv_c_ref, recv_r_ref, x_ref,
                         w1s_ref, w1r_ref, b1_ref, w2_ref, b2_ref,
                         agg_ref, hs_ref, hr_ref, acc_ref):
    e = pl.program_id(1)

    @pl.when(e == 0)
    def _init():
        xb = x_ref[...].astype(jnp.bfloat16)
        hs_ref[...] = jnp.dot(xb, w1s_ref[...],
                              preferred_element_type=jnp.float32).astype(jnp.bfloat16)
        hr_ref[...] = jnp.dot(xb, w1r_ref[...],
                              preferred_element_type=jnp.float32).astype(jnp.bfloat16)
        acc_ref[...] = jnp.zeros_like(acc_ref)

    te = send_ref.shape[0]
    nr = x_ref.shape[0]

    # Gather h_s[send] / h_r[recv] via in-register one-hot selectors on the MXU.
    # TODO(synk): for very large node counts a true dynamic gather / scatter would beat
    # the one-hot-matmul formulation; fine for typical NRI graph sizes.
    lane_iota = jax.lax.broadcasted_iota(jnp.int32, (te, nr), 1)
    onehot_s = jnp.where(lane_iota == send_ref[...], 1.0, 0.0).astype(jnp.bfloat16)
    onehot_r = jnp.where(lane_iota == recv_c_ref[...], 1.0, 0.0).astype(jnp.bfloat16)
    sh = jnp.dot(onehot_s, hs_ref[...], preferred_element_type=jnp.float32)
    rh = jnp.dot(onehot_r, hr_ref[...], preferred_element_type=jnp.float32)

    h = jnp.maximum(sh + rh + b1_ref[...], 0.0)
    # TODO(synk): training-mode dropout (do_prob > 0) not implemented; inference path only.
    msg = jnp.maximum(
        jnp.dot(h.astype(jnp.bfloat16), w2_ref[...],
                preferred_element_type=jnp.float32) + b2_ref[...], 0.0)

    # Segment-sum: agg[recv] += msg, expressed as onehot_recv^T @ msg (K = edge tile).
    # Padded edges carry the sentinel id == nr, which matches no node -> inert.
    sub_iota = jax.lax.broadcasted_iota(jnp.int32, (nr, te), 0)
    onehot_rt = jnp.where(sub_iota == recv_r_ref[...], 1.0, 0.0).astype(jnp.bfloat16)
    acc_ref[...] += jnp.dot(onehot_rt, msg.astype(jnp.bfloat16),
                            preferred_element_type=jnp.float32)

    @pl.when(e == pl.num_programs(1) - 1)
    def _finalize():
        agg_ref[...] = acc_ref[...][None]


# ---------------------------------------------------------------------------
# Kernel 2: node output MLP + residual, tiled over atoms ("parallel").
# Sums the per-partition aggregates; [x, agg] concat replaced by split matmuls.
# ---------------------------------------------------------------------------
def _node_update_kernel(agg_ref, x_ref, w3x_ref, w3a_ref, b3_ref,
                        w4_ref, b4_ref, w5_ref, b5_ref, o_ref):
    agg = jnp.sum(agg_ref[...], axis=0)                 # (TN, MP): sum over edge partitions
    x = x_ref[...]
    h = jnp.dot(x.astype(jnp.bfloat16), w3x_ref[...], preferred_element_type=jnp.float32)
    h = h + jnp.dot(agg.astype(jnp.bfloat16), w3a_ref[...], preferred_element_type=jnp.float32)
    h = jnp.maximum(h + b3_ref[...], 0.0)
    h = jnp.maximum(
        jnp.dot(h.astype(jnp.bfloat16), w4_ref[...], preferred_element_type=jnp.float32)
        + b4_ref[...], 0.0)
    pred = jnp.dot(h.astype(jnp.bfloat16), w5_ref[...],
                   preferred_element_type=jnp.float32) + b5_ref[...]
    o_ref[...] = (x + pred).astype(o_ref.dtype)         # residual: inputs + pred


def mlp_decoder_forward(inputs, rel_rec, rel_send, params, *,
                        edge_tile=512, node_tile=256, edge_partitions=2):
    """One single_step_forward of MLPDecoder (== the module's forward, pred_steps=1).

    inputs:   (num_atoms, n_in_node) f32
    rel_rec:  (num_edges, num_atoms) one-hot receiver matrix
    rel_send: (num_edges, num_atoms) one-hot sender matrix
    params:   dict w1..w5 / b1..b5 with weights stored (in, out).
    """
    x = jnp.asarray(inputs, jnp.float32)
    N, D = x.shape
    E = rel_rec.shape[0]
    msg_hid = params["w1"].shape[1]
    msg_out = params["w2"].shape[1]
    n_hid = params["w3"].shape[1]

    # Lane-dense padding of every contraction / output dimension.
    DP = _round_up(D, LANE)
    HP = _round_up(msg_hid, LANE)
    MP = _round_up(msg_out, LANE)
    GP = _round_up(n_hid, LANE)
    NR = _round_up(N, LANE)        # node count is the lane dim of the one-hot selectors

    # Edge tiling: TE edges per grid step, P partitions on a "parallel" axis (2 v7x TCs).
    TE = min(edge_tile, _round_up(E, LANE))
    n_edge_tiles = _cdiv(E, TE)
    P = edge_partitions if n_edge_tiles >= edge_partitions else 1
    TPP = _cdiv(n_edge_tiles, P)   # edge tiles per partition
    EPP = P * TPP * TE             # padded edge count

    # One-hot relation matrices -> int32 edge lists (done once, outside the kernels).
    # Padded edges get the sentinel id NR, which matches no node column (inert).
    send_ids = jnp.argmax(jnp.asarray(rel_send), axis=1).astype(jnp.int32)
    recv_ids = jnp.argmax(jnp.asarray(rel_rec), axis=1).astype(jnp.int32)
    send_ids = jnp.pad(send_ids, (0, EPP - E), constant_values=NR)
    recv_ids = jnp.pad(recv_ids, (0, EPP - E), constant_values=NR)
    send_ids_col = send_ids.reshape(EPP, 1)   # sublane layout -> (TE, NR) gather one-hots
    recv_ids_col = recv_ids.reshape(EPP, 1)
    recv_ids_row = recv_ids.reshape(1, EPP)   # lane layout    -> (NR, TE) scatter one-hot

    # Host-side zero padding. Weights are bf16 (MXU-native); x / biases / agg stay f32.
    # Padded hidden/feature columns stay exactly zero through every relu, and padded edges
    # never scatter (sentinel id), so padding never changes the real result.
    bf16 = jnp.bfloat16
    x_pad = _pad2(x, NR, DP)
    w1s = _pad2(params["w1"][:D], DP, HP, bf16)     # senders half of msg_fc1
    w1r = _pad2(params["w1"][D:], DP, HP, bf16)     # receivers half of msg_fc1
    b1 = _pad2(params["b1"], 1, HP)
    w2 = _pad2(params["w2"], HP, MP, bf16)
    b2 = _pad2(params["b2"], 1, MP)
    w3x = _pad2(params["w3"][:D], DP, GP, bf16)     # inputs half of out_fc1
    w3a = _pad2(params["w3"][D:], MP, GP, bf16)     # agg_msgs half of out_fc1
    b3 = _pad2(params["b3"], 1, GP)
    w4 = _pad2(params["w4"], GP, GP, bf16)
    b4 = _pad2(params["b4"], 1, GP)
    w5 = _pad2(params["w5"], GP, DP, bf16)
    b5 = _pad2(params["b5"], 1, DP)

    const2 = lambda p, e: (0, 0)                    # VMEM-resident operands
    edge_blk = lambda p, e: (p * TPP + e, 0)        # row-tiled edge ids

    # ---- Kernel 1: edge messages + fused segment-sum aggregation ----
    agg_parts = pl.pallas_call(
        _edge_msg_agg_kernel,
        out_shape=jax.ShapeDtypeStruct((P, NR, MP), jnp.float32),
        grid=(P, TPP),
        in_specs=[
            pl.BlockSpec((TE, 1), edge_blk),                        # send ids
            pl.BlockSpec((TE, 1), edge_blk),                        # recv ids (gather layout)
            pl.BlockSpec((1, TE), lambda p, e: (0, p * TPP + e)),   # recv ids (scatter layout)
            pl.BlockSpec((NR, DP), const2),                         # x
            pl.BlockSpec((DP, HP), const2),                         # W1 senders half
            pl.BlockSpec((DP, HP), const2),                         # W1 receivers half
            pl.BlockSpec((1, HP), const2),                          # b1
            pl.BlockSpec((HP, MP), const2),                         # W2
            pl.BlockSpec((1, MP), const2),                          # b2
        ],
        out_specs=pl.BlockSpec((1, NR, MP), lambda p, e: (p, 0, 0)),
        scratch_shapes=[
            pltpu.VMEM((NR, HP), jnp.bfloat16),   # h_s = x @ W1s  (fc1 hoisted out of edge loop)
            pltpu.VMEM((NR, HP), jnp.bfloat16),   # h_r = x @ W1r
            pltpu.VMEM((NR, MP), jnp.float32),    # f32 aggregation accumulator
        ],
        compiler_params=pltpu.CompilerParams(
            dimension_semantics=("parallel", "arbitrary"),
            vmem_limit_bytes=32 * 1024 * 1024),
    )(send_ids_col, recv_ids_col, recv_ids_row, x_pad, w1s, w1r, b1, w2, b2)

    # ---- Kernel 2: node MLP + residual, tiled over atoms ----
    if NR >= 2 * node_tile:
        TN = node_tile
    elif NR > LANE:
        TN = _round_up(_cdiv(NR, 2), SUB)   # >=2 grid steps so both v7x TCs get work
    else:
        TN = NR
    const1 = lambda n: (0, 0)

    out_pad = pl.pallas_call(
        _node_update_kernel,
        out_shape=jax.ShapeDtypeStruct((NR, DP), jnp.float32),
        grid=(pl.cdiv(NR, TN),),
        in_specs=[
            pl.BlockSpec((P, TN, MP), lambda n: (0, n, 0)),         # partial aggregates
            pl.BlockSpec((TN, DP), lambda n: (n, 0)),               # x
            pl.BlockSpec((DP, GP), const1),                         # W3 inputs half
            pl.BlockSpec((MP, GP), const1),                         # W3 agg half
            pl.BlockSpec((1, GP), const1),                          # b3
            pl.BlockSpec((GP, GP), const1),                         # W4
            pl.BlockSpec((1, GP), const1),                          # b4
            pl.BlockSpec((GP, DP), const1),                         # W5
            pl.BlockSpec((1, DP), const1),                          # b5
        ],
        out_specs=pl.BlockSpec((TN, DP), lambda n: (n, 0)),
        compiler_params=pltpu.CompilerParams(
            dimension_semantics=("parallel",),
            vmem_limit_bytes=32 * 1024 * 1024),
    )(agg_parts, x_pad, w3x, w3a, b3, w4, b4, w5, b5)

    return out_pad[:N, :D]


def init_mlp_decoder_params(key, n_in_node, msg_hid, msg_out, n_hid):
    """PyTorch nn.Linear default init (uniform +/- 1/sqrt(fan_in)); weights stored (in, out)."""
    def linear(k, fan_in, fan_out):
        kw, kb = jax.random.split(k)
        bound = 1.0 / math.sqrt(fan_in)
        w = jax.random.uniform(kw, (fan_in, fan_out), jnp.float32, -bound, bound)
        b = jax.random.uniform(kb, (1, fan_out), jnp.float32, -bound, bound)
        return w, b

    k1, k2, k3, k4, k5 = jax.random.split(key, 5)
    w1, b1 = linear(k1, 2 * n_in_node, msg_hid)        # msg_fc1
    w2, b2 = linear(k2, msg_hid, msg_out)              # msg_fc2
    w3, b3 = linear(k3, n_in_node + msg_out, n_hid)    # out_fc1
    w4, b4 = linear(k4, n_hid, n_hid)                  # out_fc2
    w5, b5 = linear(k5, n_hid, n_in_node)              # out_fc3
    return dict(w1=w1, b1=b1, w2=w2, b2=b2, w3=w3, b3=b3, w4=w4, b4=b4, w5=w5, b5=b5)


def mlp_decoder_reference(x, rel_rec, rel_send, p):
    receivers = rel_rec @ x
    senders = rel_send @ x
    pre_msg = jnp.concatenate([senders, receivers], axis=1)
    msg = jax.nn.relu(pre_msg @ p["w1"] + p["b1"])
    msg = jax.nn.relu(msg @ p["w2"] + p["b2"])
    agg = rel_rec.T @ msg
    aug = jnp.concatenate([x, agg], axis=-1)
    h = jax.nn.relu(aug @ p["w3"] + p["b3"])
    h = jax.nn.relu(h @ p["w4"] + p["b4"])
    pred = h @ p["w5"] + p["b5"]
    return x + pred


if __name__ == "__main__":
    root_key = jax.random.PRNGKey(0)

    def fully_connected(num_atoms):
        pairs = [(i, j) for i in range(num_atoms) for j in range(num_atoms) if i != j]
        send_ids = jnp.array([p[0] for p in pairs], dtype=jnp.int32)
        recv_ids = jnp.array([p[1] for p in pairs], dtype=jnp.int32)
        rel_send = jax.nn.one_hot(send_ids, num_atoms, dtype=jnp.float32)
        rel_rec = jax.nn.one_hot(recv_ids, num_atoms, dtype=jnp.float32)
        return rel_rec, rel_send

    def check(key, num_atoms, n_in_node, msg_hid, msg_out, n_hid):
        kp, kx = jax.random.split(key)
        params = init_mlp_decoder_params(kp, n_in_node, msg_hid, msg_out, n_hid)
        rel_rec, rel_send = fully_connected(num_atoms)
        x = jax.random.normal(kx, (num_atoms, n_in_node), jnp.float32)

        out = jax.block_until_ready(mlp_decoder_forward(x, rel_rec, rel_send, params))
        ref = mlp_decoder_reference(x, rel_rec, rel_send, params)
        assert out.shape == (num_atoms, n_in_node)
        err = float(jnp.max(jnp.abs(out - ref)))
        scale = float(jnp.max(jnp.abs(ref)))
        # bf16 matmul operands (f32 accumulate) -> ~1% relative error budget vs f32 reference.
        assert err <= 0.05 * scale + 0.05, f"mismatch vs reference: max_err={err}, scale={scale}"

    k_small, k_large = jax.random.split(root_key)
    # Small shapes consistent with the module: 8 atoms, n_in_node=4, hidden=32 (56 edges).
    check(k_small, 8, 4, 32, 32, 32)
    # Larger graph (40 atoms, 1560 edges): exercises multi-tile edge accumulation and the
    # 2-partition "parallel" path.
    check(k_large, 40, 4, 32, 32, 32)
    print("KERNEL_OK")
</pallas_src>

<mosaic_0001>
module attributes {stable_mosaic.version = 11 : i64} {
  func.func @_edge_msg_agg_kernel(%arg0: i32, %arg1: i32, %arg2: memref<128x1xi32, #tpu.memory_space<vmem>>, %arg3: memref<128x1xi32, #tpu.memory_space<vmem>>, %arg4: memref<1x128xi32, #tpu.memory_space<vmem>>, %arg5: memref<128x128xf32, #tpu.memory_space<vmem>>, %arg6: memref<128x128xbf16, #tpu.memory_space<vmem>>, %arg7: memref<128x128xbf16, #tpu.memory_space<vmem>>, %arg8: memref<1x128xf32, #tpu.memory_space<vmem>>, %arg9: memref<128x128xbf16, #tpu.memory_space<vmem>>, %arg10: memref<1x128xf32, #tpu.memory_space<vmem>>, %arg11: memref<1x128x128xf32, #tpu.memory_space<vmem>>, %arg12: memref<128x128xbf16, #tpu.memory_space<vmem>>, %arg13: memref<128x128xbf16, #tpu.memory_space<vmem>>, %arg14: memref<128x128xf32, #tpu.memory_space<vmem>>) attributes {dimension_semantics = [#tpu.dimension_semantics<parallel>, #tpu.dimension_semantics<arbitrary>], iteration_bounds = array<i64: 1, 1>, scalar_prefetch = 0 : i64, scratch_operands = 3 : i64, tpu.core_type = #tpu.core_type<tc>, window_params = [{transform_indices = @transform_0, window_bounds = array<i64: 128, 1>}, {transform_indices = @transform_1, window_bounds = array<i64: 128, 1>}, {transform_indices = @transform_2, window_bounds = array<i64: 1, 128>}, {pipeline_mode = #tpu.pipeline_mode<synchronous>, transform_indices = @transform_3, window_bounds = array<i64: 128, 128>}, {pipeline_mode = #tpu.pipeline_mode<synchronous>, transform_indices = @transform_4, window_bounds = array<i64: 128, 128>}, {pipeline_mode = #tpu.pipeline_mode<synchronous>, transform_indices = @transform_5, window_bounds = array<i64: 128, 128>}, {pipeline_mode = #tpu.pipeline_mode<synchronous>, transform_indices = @transform_6, window_bounds = array<i64: 1, 128>}, {pipeline_mode = #tpu.pipeline_mode<synchronous>, transform_indices = @transform_7, window_bounds = array<i64: 128, 128>}, {pipeline_mode = #tpu.pipeline_mode<synchronous>, transform_indices = @transform_8, window_bounds = array<i64: 1, 128>}, {transform_indices = @transform_9, window_bounds = array<i64: 1, 128, 128>}]} {
    %c0_i32 = arith.constant 0 : i32
    %0 = arith.cmpi eq, %arg1, %c0_i32 : i32
    %1 = arith.extui %0 : i1 to i32
    %c0_i32_0 = arith.constant 0 : i32
    %2 = arith.cmpi ne, %1, %c0_i32_0 : i32
    scf.if %2 {
      %c0_33 = arith.constant 0 : index
      %c0_34 = arith.constant 0 : index
      %52 = vector.load %arg5[%c0_33, %c0_34] : memref<128x128xf32, #tpu.memory_space<vmem>>, vector<128x128xf32>
      %53 = arith.truncf %52 : vector<128x128xf32> to vector<128x128xbf16>
      %c0_35 = arith.constant 0 : index
      %c0_36 = arith.constant 0 : index
      %54 = vector.load %arg6[%c0_35, %c0_36] : memref<128x128xbf16, #tpu.memory_space<vmem>>, vector<128x128xbf16>
      %cst_37 = arith.constant dense<0.000000e+00> : vector<128x128xf32>
      %55 = tpu.matmul %53, %54, %cst_37 {dimension_numbers = #tpu.dot_dimension_numbers<[1], [0], [0], [1], [0, 0, 1, 1], [], []>} : vector<128x128xbf16>, vector<128x128xbf16>, vector<128x128xf32> -> vector<128x128xf32>
      %56 = arith.truncf %55 : vector<128x128xf32> to vector<128x128xbf16>
      %c0_38 = arith.constant 0 : index
      %c0_39 = arith.constant 0 : index
      %57 = vector.load %arg12[%c0_38, %c0_39] : memref<128x128xbf16, #tpu.memory_space<vmem>>, vector<128x128xbf16>
      tpu.vector_store %arg12[%c0_38, %c0_39], %56 {strides = array<i32>} : memref<128x128xbf16, #tpu.memory_space<vmem>>, vector<128x128xbf16>,
      %c0_40 = arith.constant 0 : index
      %c0_41 = arith.constant 0 : index
      %58 = vector.load %arg7[%c0_40, %c0_41] : memref<128x128xbf16, #tpu.memory_space<vmem>>, vector<128x128xbf16>
      %cst_42 = arith.constant dense<0.000000e+00> : vector<128x128xf32>
      %59 = tpu.matmul %53, %58, %cst_42 {dimension_numbers = #tpu.dot_dimension_numbers<[1], [0], [0], [1], [0, 0, 1, 1], [], []>} : vector<128x128xbf16>, vector<128x128xbf16>, vector<128x128xf32> -> vector<128x128xf32>
      %60 = arith.truncf %59 : vector<128x128xf32> to vector<128x128xbf16>
      %c0_43 = arith.constant 0 : index
      %c0_44 = arith.constant 0 : index
      %61 = vector.load %arg13[%c0_43, %c0_44] : memref<128x128xbf16, #tpu.memory_space<vmem>>, vector<128x128xbf16>
      tpu.vector_store %arg13[%c0_43, %c0_44], %60 {strides = array<i32>} : memref<128x128xbf16, #tpu.memory_space<vmem>>, vector<128x128xbf16>,
      %cst_45 = arith.constant 0.000000e+00 : f32
      %62 = vector.broadcast %cst_45 : f32 to vector<128x128xf32>
      %c0_46 = arith.constant 0 : index
      %c0_47 = arith.constant 0 : index
      %63 = vector.load %arg14[%c0_46, %c0_47] : memref<128x128xf32, #tpu.memory_space<vmem>>, vector<128x128xf32>
      tpu.vector_store %arg14[%c0_46, %c0_47], %62 {strides = array<i32>} : memref<128x128xf32, #tpu.memory_space<vmem>>, vector<128x128xf32>,
    } else {
    }
    %3 = tpu.iota {dimensions = array<i32: 1>} : vector<128x128xi32>
    %c0 = arith.constant 0 : index
    %c0_1 = arith.constant 0 : index
    %4 = vector.load %arg2[%c0, %c0_1] : memref<128x1xi32, #tpu.memory_space<vmem>>, vector<128x1xi32>
    %5 = vector.broadcast %4 : vector<128x1xi32> to vector<128x128xi32>
    %6 = arith.cmpi eq, %3, %5 : vector<128x128xi32>
    %cst = arith.constant 1.000000e+00 : f32
    %cst_2 = arith.constant 0.000000e+00 : f32
    %7 = vector.broadcast %cst : f32 to vector<128x128xf32>
    %8 = vector.broadcast %cst_2 : f32 to vector<128x128xf32>
    %9 = arith.select %6, %7, %8 : vector<128x128xi1>, vector<128x128xf32>
    %10 = arith.truncf %9 : vector<128x128xf32> to vector<128x128xbf16>
    %c0_3 = arith.constant 0 : index
    %c0_4 = arith.constant 0 : index
    %11 = vector.load %arg3[%c0_3, %c0_4] : memref<128x1xi32, #tpu.memory_space<vmem>>, vector<128x1xi32>
    %12 = vector.broadcast %11 : vector<128x1xi32> to vector<128x128xi32>
    %13 = arith.cmpi eq, %3, %12 : vector<128x128xi32>
    %cst_5 = arith.constant 1.000000e+00 : f32
    %cst_6 = arith.constant 0.000000e+00 : f32
    %14 = vector.broadcast %cst_5 : f32 to vector<128x128xf32>
    %15 = vector.broadcast %cst_6 : f32 to vector<128x128xf32>
    %16 = arith.select %13, %14, %15 : vector<128x128xi1>, vector<128x128xf32>
    %17 = arith.truncf %16 : vector<128x128xf32> to vector<128x128xbf16>
    %c0_7 = arith.constant 0 : index
    %c0_8 = arith.constant 0 : index
    %18 = vector.load %arg12[%c0_7, %c0_8] : memref<128x128xbf16, #tpu.memory_space<vmem>>, vector<128x128xbf16>
    %cst_9 = arith.constant dense<0.000000e+00> : vector<128x128xf32>
    %19 = tpu.matmul %10, %18, %cst_9 {dimension_numbers = #tpu.dot_dimension_numbers<[1], [0], [0], [1], [0, 0, 1, 1], [], []>} : vector<128x128xbf16>, vector<128x128xbf16>, vector<128x128xf32> -> vector<128x128xf32>
    %c0_10 = arith.constant 0 : index
    %c0_11 = arith.constant 0 : index
    %20 = vector.load %arg13[%c0_10, %c0_11] : memref<128x128xbf16, #tpu.memory_space<vmem>>, vector<128x128xbf16>
    %cst_12 = arith.constant dense<0.000000e+00> : vector<128x128xf32>
    %21 = tpu.matmul %17, %20, %cst_12 {dimension_numbers = #tpu.dot_dimension_numbers<[1], [0], [0], [1], [0, 0, 1, 1], [], []>} : vector<128x128xbf16>, vector<128x128xbf16>, vector<128x128xf32> -> vector<128x128xf32>
    %22 = arith.addf %19, %21 : vector<128x128xf32>
    %c0_13 = arith.constant 0 : index
    %c0_14 = arith.constant 0 : index
    %23 = vector.load %arg8[%c0_13, %c0_14] : memref<1x128xf32, #tpu.memory_space<vmem>>, vector<1x128xf32>
    %24 = vector.broadcast %23 : vector<1x128xf32> to vector<128x128xf32>
    %25 = arith.addf %22, %24 : vector<128x128xf32>
    %cst_15 = arith.constant 0.000000e+00 : f32
    %26 = vector.broadcast %cst_15 : f32 to vector<128x128xf32>
    %27 = arith.maximumf %25, %26 : vector<128x128xf32>
    %28 = arith.truncf %27 : vector<128x128xf32> to vector<128x128xbf16>
    %c0_16 = arith.constant 0 : index
    %c0_17 = arith.constant 0 : index
    %29 = vector.load %arg9[%c0_16, %c0_17] : memref<128x128xbf16, #tpu.memory_space<vmem>>, vector<128x128xbf16>
    %cst_18 = arith.constant dense<0.000000e+00> : vector<128x128xf32>
    %30 = tpu.matmul %28, %29, %cst_18 {dimension_numbers = #tpu.dot_dimension_numbers<[1], [0], [0], [1], [0, 0, 1, 1], [], []>} : vector<128x128xbf16>, vector<128x128xbf16>, vector<128x128xf32> -> vector<128x128xf32>
    %c0_19 = arith.constant 0 : index
    %c0_20 = arith.constant 0 : index
    %31 = vector.load %arg10[%c0_19, %c0_20] : memref<1x128xf32, #tpu.memory_space<vmem>>, vector<1x128xf32>
    %32 = vector.broadcast %31 : vector<1x128xf32> to vector<128x128xf32>
    %33 = arith.addf %30, %32 : vector<128x128xf32>
    %cst_21 = arith.constant 0.000000e+00 : f32
    %34 = vector.broadcast %cst_21 : f32 to vector<128x128xf32>
    %35 = arith.maximumf %33, %34 : vector<128x128xf32>
    %36 = tpu.iota {dimensions = array<i32: 0>} : vector<128x128xi32>
    %c0_22 = arith.constant 0 : index
    %c0_23 = arith.constant 0 : index
    %37 = vector.load %arg4[%c0_22, %c0_23] : memref<1x128xi32, #tpu.memory_space<vmem>>, vector<1x128xi32>
    %38 = vector.broadcast %37 : vector<1x128xi32> to vector<128x128xi32>
    %39 = arith.cmpi eq, %36, %38 : vector<128x128xi32>
    %cst_24 = arith.constant 1.000000e+00 : f32
    %cst_25 = arith.constant 0.000000e+00 : f32
    %40 = vector.broadcast %cst_24 : f32 to vector<128x128xf32>
    %41 = vector.broadcast %cst_25 : f32 to vector<128x128xf32>
    %42 = arith.select %39, %40, %41 : vector<128x128xi1>, vector<128x128xf32>
    %43 = arith.truncf %42 : vector<128x128xf32> to vector<128x128xbf16>
    %c0_26 = arith.constant 0 : index
    %c0_27 = arith.constant 0 : index
    %44 = vector.load %arg14[%c0_26, %c0_27] : memref<128x128xf32, #tpu.memory_space<vmem>>, vector<128x128xf32>
    %45 = arith.truncf %35 : vector<128x128xf32> to vector<128x128xbf16>
    %cst_28 = arith.constant dense<0.000000e+00> : vector<128x128xf32>
    %46 = tpu.matmul %43, %45, %cst_28 {dimension_numbers = #tpu.dot_dimension_numbers<[1], [0], [0], [1], [0, 0, 1, 1], [], []>} : vector<128x128xbf16>, vector<128x128xbf16>, vector<128x128xf32> -> vector<128x128xf32>
    %47 = arith.addf %44, %46 : vector<128x128xf32>
    %c0_29 = arith.constant 0 : index
    %c0_30 = arith.constant 0 : index
    %48 = vector.load %arg14[%c0_29, %c0_30] : memref<128x128xf32, #tpu.memory_space<vmem>>, vector<128x128xf32>
    tpu.vector_store %arg14[%c0_29, %c0_30], %47 {strides = array<i32>} : memref<128x128xf32, #tpu.memory_space<vmem>>, vector<128x128xf32>,
    %c0_i32_31 = arith.constant 0 : i32
    %49 = arith.cmpi eq, %arg1, %c0_i32_31 : i32
    %50 = arith.extui %49 : i1 to i32
    %c0_i32_32 = arith.constant 0 : i32
    %51 = arith.cmpi ne, %50, %c0_i32_32 : i32
    scf.if %51 {
      %c0_33 = arith.constant 0 : index
      %c0_34 = arith.constant 0 : index
      %52 = vector.load %arg14[%c0_33, %c0_34] : memref<128x128xf32, #tpu.memory_space<vmem>>, vector<128x128xf32>
      %53 = vector.shape_cast %52 : vector<128x128xf32> to vector<1x128x128xf32>
      %c0_35 = arith.constant 0 : index
      %c0_36 = arith.constant 0 : index
      %c0_37 = arith.constant 0 : index
      %54 = vector.load %arg11[%c0_35, %c0_36, %c0_37] : memref<1x128x128xf32, #tpu.memory_space<vmem>>, vector<1x128x128xf32>
      tpu.vector_store %arg11[%c0_35, %c0_36, %c0_37], %53 {strides = array<i32>} : memref<1x128x128xf32, #tpu.memory_space<vmem>>, vector<1x128x128xf32>,
    } else {
    }
    return
  }
  func.func @transform_0(%arg0: i32, %arg1: i32) -> (i32, i32) {
    %c1_i32 = arith.constant 1 : i32
    %0 = arith.muli %arg0, %c1_i32 : i32
    %1 = arith.addi %0, %arg1 : i32
    %c0_i32 = arith.constant 0 : i32
    %c0_i32_0 = arith.constant 0 : i32
    return %1, %c0_i32 : i32, i32
  }
  func.func @transform_1(%arg0: i32, %arg1: i32) -> (i32, i32) {
    %c1_i32 = arith.constant 1 : i32
    %0 = arith.muli %arg0, %c1_i32 : i32
    %1 = arith.addi %0, %arg1 : i32
    %c0_i32 = arith.constant 0 : i32
    %c0_i32_0 = arith.constant 0 : i32
    return %1, %c0_i32 : i32, i32
  }
  func.func @transform_2(%arg0: i32, %arg1: i32) -> (i32, i32) {
    %c1_i32 = arith.constant 1 : i32
    %0 = arith.muli %arg0, %c1_i32 : i32
    %1 = arith.addi %0, %arg1 : i32
    %c0_i32 = arith.constant 0 : i32
    %c0_i32_0 = arith.constant 0 : i32
    return %c0_i32, %1 : i32, i32
  }
  func.func @transform_3(%arg0: i32, %arg1: i32) -> (i32, i32) {
    %c0_i32 = arith.constant 0 : i32
    %c0_i32_0 = arith.constant 0 : i32
    %c0_i32_1 = arith.constant 0 : i32
    return %c0_i32, %c0_i32_0 : i32, i32
  }
  func.func @transform_4(%arg0: i32, %arg1: i32) -> (i32, i32) {
    %c0_i32 = arith.constant 0 : i32
    %c0_i32_0 = arith.constant 0 : i32
    %c0_i32_1 = arith.constant 0 : i32
    return %c0_i32, %c0_i32_0 : i32, i32
  }
  func.func @transform_5(%arg0: i32, %arg1: i32) -> (i32, i32) {
    %c0_i32 = arith.constant 0 : i32
    %c0_i32_0 = arith.constant 0 : i32
    %c0_i32_1 = arith.constant 0 : i32
    return %c0_i32, %c0_i32_0 : i32, i32
  }
  func.func @transform_6(%arg0: i32, %arg1: i32) -> (i32, i32) {
    %c0_i32 = arith.constant 0 : i32
    %c0_i32_0 = arith.constant 0 : i32
    %c0_i32_1 = arith.constant 0 : i32
    return %c0_i32, %c0_i32_0 : i32, i32
  }
  func.func @transform_7(%arg0: i32, %arg1: i32) -> (i32, i32) {
    %c0_i32 = arith.constant 0 : i32
    %c0_i32_0 = arith.constant 0 : i32
    %c0_i32_1 = arith.constant 0 : i32
    return %c0_i32, %c0_i32_0 : i32, i32
  }
  func.func @transform_8(%arg0: i32, %arg1: i32) -> (i32, i32) {
    %c0_i32 = arith.constant 0 : i32
    %c0_i32_0 = arith.constant 0 : i32
    %c0_i32_1 = arith.constant 0 : i32
    return %c0_i32, %c0_i32_0 : i32, i32
  }
  func.func @transform_9(%arg0: i32, %arg1: i32) -> (i32, i32, i32) {
    %c0_i32 = arith.constant 0 : i32
    %c0_i32_0 = arith.constant 0 : i32
    %c0_i32_1 = arith.constant 0 : i32
    return %arg0, %c0_i32, %c0_i32_0 : i32, i32, i32
  }
}

</mosaic_0001>

<bundles_post_ra>
// kernel: tpu_custom_call.1
= control target key start
LH: loop header
LB: loop body
LE: loop exit
PB: predicated region body
PF: predicated region fallthrough
CT: control target
= control target key end

     0   :  { %14 = vsyncpa [#allocation6], 0  ;;  %s2753_s0 = inlined_call_operand.vmem [shape: s32[128,1], index: 0, kind: input, shape index: {}]   ;;  %s2754_s1 = inlined_call_operand.vmem [shape: s32[128,1], index: 1, kind: input, shape index: {}]   ;;  %s2755_s2 = inlined_call_operand.vmem [shape: s32[1,128], index: 2, kind: input, shape index: {}]   ;;  %s2756_s3 = inlined_call_operand.vmem [shape: f32[128,128], index: 3, kind: input, shape index: {}]   ;;  %s2757_s4 = inlined_call_operand.vmem [shape: bf16[128,128], index: 4, kind: input, shape index: {}]   ;;  %s2758_s5 = inlined_call_operand.vmem [shape: bf16[128,128], index: 5, kind: input, shape index: {}]   ;;  %s2759_s6 = inlined_call_operand.vmem [shape: f32[1,128], index: 6, kind: input, shape index: {}]   ;;  %s2760_s7 = inlined_call_operand.hbm [shape: bf16[128,128], index: 7, kind: input, shape index: {}]   ;;  %s2761_s8 = inlined_call_operand.vmem [shape: f32[1,128], index: 8, kind: input, shape index: {}]   ;;  %s2762_s9 = inlined_call_operand.hbm [shape: f32[1,128,128], index: 9, kind: output, shape index: {}]  }
   0x1   :  { %15 = vsyncpa [#allocation7], 0  ;;  %s2308_s30 = smov [#allocation5]  }
   0x2   :  { %s56_s10 = sshll.u32 %s2308_s30, 4  ;;  %s57_s10 = int_to_ptr.vmem [resolvable:$true] %s56_s10 }
   0x3   :  { %s2272_s11 = scalar_lea.vmem %s57_s10, 1024  ;;  %p2277_p1 = scmp.lt.s32.totalorder %s57_s10, %s57_s10 }
   0x4   :  { %p2273_p0 = scmp.ne.s32.totalorder %s57_s10, %s2272_s11  ;;  %p2278_p2 = scmp.lt.s32.totalorder %s2272_s11, %s2272_s11 }
   0x6   :  { %p2279_p3 = por %p2278_p2, %p2277_p1 }
   0x8   :  { %p2280_p4 = pnand %p2279_p3, %p2273_p0 }
   0xa   :  { %2283 = shalt.err (!%p2280_p4)
}
   0xb   :  { %s2309_s12 = smov 64   ;;  %s2310_s13 = smov 4  }
   0xc   :  { %62 = dma.hbm_to_vmem [thread:$0]  %s2760_s7, 1024, %s57_s10, [#allocation6], %s2309_s12, %s2309_s12, %s2310_s13  }
   0xd   :  { %2304 = dma.done.wait [#allocation6], 1024  }
   0xe   :  { %2305 = vsyncadd [#allocation6], 4294966272  ;;  %v2311_v0 = vmov 0   ;;  %v2224_v1 = vld [vmem:[%s2757_s4 + $0x38] sm:$0xff]   ;;  %v2226_v3 = vld [vmem:[%s2757_s4 + $0x30] sm:$0xff]  }
   0xf   :  { %2223 = vset.pattern.permute.xlu1 %v2311_v0  ;;  %2222 = vset.pattern.permute.xlu0 %v2311_v0  ;;  %v2225_v2 = vld [vmem:[%s2758_s5 + $0x38] sm:$0xff]   ;;  %v2227_v4 = vld [vmem:[%s2758_s5 + $0x30] sm:$0xff]   ;;  %v2228_v5 = vld [vmem:[%s2757_s4 + $0x28] sm:$0xff]  }
  0x10   :  { %2022 = vmatprep.subr.bf16.mxu0 %v2224_v1  ;;  %2054 = vmatprep.subr.bf16.mxu1 %v2225_v2  ;;  %v2229_v6 = vld [vmem:[%s2758_s5 + $0x28] sm:$0xff]   ;;  %v2230_v7 = vld [vmem:[%s2757_s4 + $0x20] sm:$0xff]   ;;  %v2232_v9 = vld [vmem:[%s2757_s4 + $0x18] sm:$0xff]  }
  0x11   :  { %2023 = vmatpush3.bf16.msra.mxu0 %v2224_v1  ;;  %2055 = vmatpush3.bf16.msra.mxu1 %v2225_v2  ;;  %v2231_v8 = vld [vmem:[%s2758_s5 + $0x20] sm:$0xff]   ;;  %v2233_v10 = vld [vmem:[%s2758_s5 + $0x18] sm:$0xff]   ;;  %v2234_v11 = vld [vmem:[%s2757_s4 + $0x10] sm:$0xff]  }
  0x12   :  { %2024 = vmatprep.subr.bf16.mxu0 %v2226_v3  ;;  %2056 = vmatprep.subr.bf16.mxu1 %v2227_v4  ;;  %v110_v12 = vld [vmem:[%s2756_s3] sm:$0xff]  ;;  %v111_v13 = vld [vmem:[%s2756_s3 + $0x8] sm:$0xff]  ;;  %v2235_v14 = vld [vmem:[%s2758_s5 + $0x10] sm:$0xff]  }
  0x13   :  { %v126_v15 = vpack.c.bf16 %v111_v13, %v110_v12  ;;  %v2236_v16 = vld [vmem:[%s2757_s4 + $0x8] sm:$0xff]   ;;  %v738_v18 = vld [vmem:[%s2754_s1] sm:$0xff]  ;;  %v112_v24 = vld [vmem:[%s2756_s3 + $0x10] sm:$0xff] }
  0x14   :  { %v2237_v17 = vld [vmem:[%s2758_s5 + $0x8] sm:$0xff]   ;;  %v634_v19 = vld [vmem:[%s2753_s0] sm:$0xff]  ;;  %755 = vperm.xlu1 %2223, %v738_v18   ;;  %v113_v25 = vld [vmem:[%s2756_s3 + $0x18] sm:$0xff] }
  0x15   :  { %2025 = vmatpush3.bf16.msra.mxu0 %v2226_v3  ;;  %2057 = vmatpush3.bf16.msra.mxu1 %v2227_v4  ;;  %v739_v20 = vld [vmem:[%s2754_s1 + $0x8] sm:$0xff]  ;;  %v2238_v22 = vld [vmem:[%s2757_s4] sm:$0xff]   ;;  %v637_v26 = vld [vmem:[%s2753_s0 + $0x18] sm:$0xff]  ;;  %v127_v30 = vpack.c.bf16 %v113_v25, %v112_v24 }
  0x16   :  { %2026 = vmatprep.subr.bf16.mxu0 %v2228_v5  ;;  %2058 = vmatprep.subr.bf16.mxu1 %v2229_v6  ;;  %v635_v21 = vld [vmem:[%s2753_s0 + $0x8] sm:$0xff]  ;;  %v2239_v23 = vld [vmem:[%s2758_s5] sm:$0xff]   ;;  %v636_v27 = vld [vmem:[%s2753_s0 + $0x10] sm:$0xff] }
  0x17   :  { %2038 = vmatprep.mubr.bf16.mxu0 %v126_v15  ;;  %2070 = vmatprep.mubr.bf16.mxu1 %v126_v15  ;;  %v114_v28 = vld [vmem:[%s2756_s3 + $0x20] sm:$0xff]  ;;  %v115_v29 = vld [vmem:[%s2756_s3 + $0x28] sm:$0xff]  ;;  %v741_v32 = vld [vmem:[%s2754_s1 + $0x18] sm:$0xff]  ;;  %v2312_v15 = vmov 1.0|1.0  }
  0x18   :  { %651 = vperm.xlu0 %2222, %v634_v19   ;;  %758 = vperm.xlu1 %2223, %v739_v20   ;;  %v128_v31 = vpack.c.bf16 %v115_v29, %v114_v28  ;;  %v740_v33 = vld [vmem:[%s2754_s1 + $0x10] sm:$0xff]  ;;  %v117_v35 = vld [vmem:[%s2756_s3 + $0x38] sm:$0xff]  ;;  %v639_v36 = vld [vmem:[%s2753_s0 + $0x28] sm:$0xff] }
  0x19   :  { %2027 = vmatpush3.bf16.msra.mxu0 %v2228_v5  ;;  %2059 = vmatpush3.bf16.msra.mxu1 %v2229_v6  ;;  %v116_v34 = vld [vmem:[%s2756_s3 + $0x30] sm:$0xff]  ;;  %v118_v37 = vld [vmem:[%s2756_s3 + $0x40] sm:$0xff]  ;;  %v119_v38 = vld [vmem:[%s2756_s3 + $0x48] sm:$0xff] }
  0x1a   :  { %2028 = vmatprep.subr.bf16.mxu0 %v2230_v7  ;;  %2060 = vmatprep.subr.bf16.mxu1 %v2231_v8  ;;  %v638_v39 = vld [vmem:[%s2753_s0 + $0x20] sm:$0xff]  ;;  %v129_v40 = vpack.c.bf16 %v117_v35, %v116_v34  ;;  %v130_v41 = vpack.c.bf16 %v119_v38, %v118_v37  ;;  %v743_v42 = vld [vmem:[%s2754_s1 + $0x28] sm:$0xff]  ;;  %v120_v44 = vld [vmem:[%s2756_s3 + $0x50] sm:$0xff] }
  0x1b   :  { %v742_v43 = vld [vmem:[%s2754_s1 + $0x20] sm:$0xff]  ;;  %v121_v45 = vld [vmem:[%s2756_s3 + $0x58] sm:$0xff]  ;;  %v123_v48 = vld [vmem:[%s2756_s3 + $0x68] sm:$0xff] }
  0x1c   :  { %654 = vperm.xlu0 %2222, %v635_v21   ;;  %660 = vperm.xlu1 %2223, %v637_v26   ;;  %v641_v46 = vld [vmem:[%s2753_s0 + $0x38] sm:$0xff]  ;;  %v122_v47 = vld [vmem:[%s2756_s3 + $0x60] sm:$0xff]  ;;  %v640_v49 = vld [vmem:[%s2753_s0 + $0x30] sm:$0xff]  ;;  %v131_v50 = vpack.c.bf16 %v121_v45, %v120_v44 }
  0x1d   :  { %2029 = vmatpush3.bf16.msra.mxu0 %v2230_v7  ;;  %2061 = vmatpush3.bf16.msra.mxu1 %v2231_v8  ;;  %v132_v51 = vpack.c.bf16 %v123_v48, %v122_v47  ;;  %v745_v52 = vld [vmem:[%s2754_s1 + $0x38] sm:$0xff]  ;;  %v744_v53 = vld [vmem:[%s2754_s1 + $0x30] sm:$0xff]  ;;  %v643_v56 = vld [vmem:[%s2753_s0 + $0x48] sm:$0xff] }
  0x1e   :  { %2030 = vmatprep.subr.bf16.mxu0 %v2232_v9  ;;  %2062 = vmatprep.subr.bf16.mxu1 %v2233_v10  ;;  %v124_v54 = vld [vmem:[%s2756_s3 + $0x70] sm:$0xff]  ;;  %v125_v55 = vld [vmem:[%s2756_s3 + $0x78] sm:$0xff]  ;;  %v642_v57 = vld [vmem:[%s2753_s0 + $0x40] sm:$0xff] }
  0x1f   :  { %v133_v58 = vpack.c.bf16 %v125_v55, %v124_v54  ;;  %v747_v59 = vld [vmem:[%s2754_s1 + $0x48] sm:$0xff]  ;;  %v746_v60 = vld [vmem:[%s2754_s1 + $0x40] sm:$0xff]  ;;  %v645_v61 = vld [vmem:[%s2753_s0 + $0x58] sm:$0xff] }
  0x20   :  { %657 = vperm.xlu0 %2222, %v636_v27   ;;  %764 = vperm.xlu1 %2223, %v741_v32   ;;  %v644_v62 = vld [vmem:[%s2753_s0 + $0x50] sm:$0xff]  ;;  %v749_v63 = vld [vmem:[%s2754_s1 + $0x58] sm:$0xff]  ;;  %v647_v1 = vld [vmem:[%s2753_s0 + $0x68] sm:$0xff] }
  0x21   :  { %2031 = vmatpush3.bf16.msra.mxu0 %v2232_v9  ;;  %2063 = vmatpush3.bf16.msra.mxu1 %v2233_v10  ;;  %v748_v0 = vld [vmem:[%s2754_s1 + $0x50] sm:$0xff]  ;;  %v646_v2 = vld [vmem:[%s2753_s0 + $0x60] sm:$0xff]  ;;  %v751_v3 = vld [vmem:[%s2754_s1 + $0x68] sm:$0xff]  ;;  %v632_v9 = vlaneseq }
  0x22   :  { %2032 = vmatprep.subr.bf16.mxu0 %v2234_v11  ;;  %2064 = vmatprep.subr.bf16.mxu1 %v2235_v14  ;;  %v750_v4 = vld [vmem:[%s2754_s1 + $0x60] sm:$0xff]  ;;  %v649_v5 = vld [vmem:[%s2753_s0 + $0x78] sm:$0xff]  ;;  %v648_v6 = vld [vmem:[%s2753_s0 + $0x70] sm:$0xff] }
  0x23   :  { %v753_v7 = vld [vmem:[%s2754_s1 + $0x78] sm:$0xff]  ;;  %v752_v8 = vld [vmem:[%s2754_s1 + $0x70] sm:$0xff]  ;;  %v2562_v10 = vand.u32 127, %v632_v9 }
  0x24   :  { %761 = vperm.xlu0 %2222, %v740_v33   ;;  %666 = vperm.xlu1 %2223, %v639_v36  }
  0x25   :  { %2033 = vmatpush3.bf16.msra.mxu0 %v2234_v11  ;;  %2065 = vmatpush3.bf16.msra.mxu1 %v2235_v14 }
  0x26   :  { %2034 = vmatprep.subr.bf16.mxu0 %v2236_v16  ;;  %2066 = vmatprep.subr.bf16.mxu1 %v2237_v17 }
  0x28   :  { %663 = vperm.xlu0 %2222, %v638_v39   ;;  %770 = vperm.xlu1 %2223, %v743_v42  }
  0x29   :  { %2035 = vmatpush3.bf16.msra.mxu0 %v2236_v16  ;;  %2067 = vmatpush3.bf16.msra.mxu1 %v2237_v17 }
  0x2a   :  { %2036 = vmatprep.subr.bf16.mxu0 %v2238_v22  ;;  %2068 = vmatprep.subr.bf16.mxu1 %v2239_v23 }
  0x2c   :  { %767 = vperm.xlu0 %2222, %v742_v43   ;;  %672 = vperm.xlu1 %2223, %v641_v46  }
  0x2d   :  { %2037 = vmatpush3.bf16.msra.mxu0 %v2238_v22  ;;  %2069 = vmatpush3.bf16.msra.mxu1 %v2239_v23 }
  0x30   :  { %2039 = vmatmul.mubr.bf16.vlgmr.msra.gmra.mxu0 %v127_v30  ;;  %2071 = vmatmul.mubr.bf16.vlgmr.msra.gmra.mxu1 %v127_v30 }
  0x31   :  { %2042 = vmatprep.mubr.bf16.mxu0 %v128_v31  ;;  %2074 = vmatprep.mubr.bf16.mxu1 %v128_v31 }
  0x32   :  { %669 = vperm.xlu0 %2222, %v640_v49   ;;  %776 = vperm.xlu1 %2223, %v745_v52  }
  0x36   :  { %773 = vperm.xlu0 %2222, %v744_v53   ;;  %678 = vperm.xlu1 %2223, %v643_v56  }
  0x38   :  { %2043 = vmatmul.mubr.bf16.gmra.mxu0 %v129_v40  ;;  %2075 = vmatmul.mubr.bf16.gmra.mxu1 %v129_v40 }
  0x39   :  { %2046 = vmatprep.mubr.bf16.mxu0 %v130_v41  ;;  %2078 = vmatprep.mubr.bf16.mxu1 %v130_v41 }
  0x3a   :  { %675 = vperm.xlu0 %2222, %v642_v57   ;;  %782 = vperm.xlu1 %2223, %v747_v59  }
  0x3e   :  { %779 = vperm.xlu0 %2222, %v746_v60   ;;  %684 = vperm.xlu1 %2223, %v645_v61  }
  0x40   :  { %2047 = vmatmul.mubr.bf16.gmra.mxu0 %v131_v50  ;;  %2079 = vmatmul.mubr.bf16.gmra.mxu1 %v131_v50 }
  0x41   :  { %2050 = vmatprep.mubr.bf16.mxu0 %v132_v51  ;;  %2082 = vmatprep.mubr.bf16.mxu1 %v132_v51 }
  0x42   :  { %681 = vperm.xlu0 %2222, %v644_v62   ;;  %788 = vperm.xlu1 %2223, %v749_v63  }
  0x46   :  { %785 = vperm.xlu0 %2222, %v748_v0   ;;  %690 = vperm.xlu1 %2223, %v647_v1  }
  0x48   :  { %2051 = vmatmul.mubr.bf16.gmra.mxu0 %v133_v58  ;;  %2083 = vmatmul.mubr.bf16.gmra.mxu1 %v133_v58 }
  0x4a   :  { %687 = vperm.xlu0 %2222, %v646_v2   ;;  %794 = vperm.xlu1 %2223, %v751_v3  }
  0x4e   :  { %791 = vperm.xlu0 %2222, %v750_v4   ;;  %696 = vperm.xlu1 %2223, %v649_v5  }
  0x52   :  { %693 = vperm.xlu0 %2222, %v648_v6   ;;  %800 = vperm.xlu1 %2223, %v753_v7  }
  0x56   :  { %797 = vperm.xlu0 %2222, %v752_v8  }
  0x8f   :  { %v756_v11 = vpop.permute.xlu1 %755 }
  0x90   :  { %vm802_vm0 = vcmp.eq.s32.totalorder %v2562_v10, %v756_v11 }
  0x93   :  { %v652_v12 = vpop.permute.xlu0 %651  ;;  %v759_v13 = vpop.permute.xlu1 %758 }
  0x94   :  { %vm698_vm1 = vcmp.eq.s32.totalorder %v2562_v10, %v652_v12  ;;  %vm803_vm2 = vcmp.eq.s32.totalorder %v2562_v10, %v759_v13 }
  0x95   :  { %vm1733_vm4 = vmpackc.low %vm803_vm2, %vm802_vm0 }
  0x96   :  { %2102 = vmatprep.mubr.msk.bf16.mxu0 %vm1733_vm4, %v2312_v15 }
  0x97   :  { %v655_v14 = vpop.permute.xlu0 %654  ;;  %v2570_v31 = vpop.permute.xlu1 %660 }
  0x98   :  { %vm699_vm3 = vcmp.eq.s32.totalorder %v2562_v10, %v655_v14  ;;  %vm701_vm6 = vcmp.eq.s32.totalorder %v2562_v10, %v2570_v31  ;;  %v2257_v31 = vld [vmem:[#allocation5 + $0x30] sm:$0xff]  }
  0x99   :  { %vm1757_vm5 = vmpackc.low %vm699_vm3, %vm698_vm1 }
  0x9a   :  { %2134 = vmatprep.mubr.msk.bf16.mxu1 %vm1757_vm5, %v2312_v15 }
  0x9b   :  { %v2572_v33 = vpop.permute.xlu0 %657  ;;  %v2574_v43 = vpop.permute.xlu1 %764 }
  0x9c   :  { %vm700_vm7 = vcmp.eq.s32.totalorder %v2562_v10, %v2572_v33  ;;  %vm805_vm8 = vcmp.eq.s32.totalorder %v2562_v10, %v2574_v43  ;;  %v2258_v43 = vld [vmem:[#allocation5 + $0x28] sm:$0xff]  }
  0x9d   :  { %vm1759_vm12 = vmpackc.low %vm701_vm6, %vm700_vm7 }
  0x9f   :  { %v2576_v45 = vpop.permute.xlu0 %761  ;;  %v2578_v53 = vpop.permute.xlu1 %666 }
  0xa0   :  { %vm804_vm9 = vcmp.eq.s32.totalorder %v2562_v10, %v2576_v45  ;;  %vm703_vm10 = vcmp.eq.s32.totalorder %v2562_v10, %v2578_v53  ;;  %v2262_v53 = vld [vmem:[#allocation5 + $0x8] sm:$0xff]  }
  0xa1   :  { %vm1735_vm15 = vmpackc.low %vm805_vm8, %vm804_vm9 }
  0xa3   :  { %v2580_v56 = vpop.permute.xlu0 %663  ;;  %v2582_v63 = vpop.permute.xlu1 %770 }
  0xa4   :  { %vm702_vm11 = vcmp.eq.s32.totalorder %v2562_v10, %v2580_v56  ;;  %vm807_vm13 = vcmp.eq.s32.totalorder %v2562_v10, %v2582_v63 }
  0xa5   :  { %vm1761_vm0 = vmpackc.low %vm703_vm10, %vm702_vm11 }
  0xa7   :  { %v2584_v2 = vpop.permute.xlu0 %767  ;;  %v2586_v8 = vpop.permute.xlu1 %672 }
  0xa8   :  { %vm806_vm14 = vcmp.eq.s32.totalorder %v2562_v10, %v2584_v2  ;;  %vm705_vm2 = vcmp.eq.s32.totalorder %v2562_v10, %v2586_v8 }
  0xa9   :  { %vm1737_vm1 = vmpackc.low %vm807_vm13, %vm806_vm14 }
  0xad   :  { %v2588_v11 = vpop.permute.xlu0 %669 }
  0xae   :  { %vm704_vm3 = vcmp.eq.s32.totalorder %v2562_v10, %v2588_v11 }
  0xaf   :  { %vm1763_vm8 = vmpackc.low %vm705_vm2, %vm704_vm3 }
  0xf0   :  { %v2040_v16 = vpop.f32.mrf.mxu0  ;;  %v2072_v17 = vpop.f32.mrf.mxu1 }
  0xf2   :  { %v232_v18 = vpop.f32.mrf.mxu0  ;;  %v473_v19 = vpop.f32.mrf.mxu1 }
  0xf4   :  { %v2041_v20 = vpop.f32.mrf.mxu0  ;;  %v2073_v22 = vpop.f32.mrf.mxu1 }
  0xf5   :  { %v1840_v21 = vpack.c.bf16 %v2041_v20, %v2040_v16  ;;  %v1880_v23 = vpack.c.bf16 %v2073_v22, %v2072_v17  ;;  %v2590_v17 = vpop.permute.xlu1 %776 }
  0xf6   :  { %v235_v24 = vpop.f32.mrf.mxu0  ;;  %v476_v26 = vpop.f32.mrf.mxu1  ;;  %vm809_vm4 = vcmp.eq.s32.totalorder %v2562_v10, %v2590_v17 }
  0xf7   :  { %1912 = vst [vmem:[#allocation2 + $0x8] sm:$0xff] %v1840_v21   ;;  %v1835_v25 = vpack.c.bf16 %v235_v24, %v232_v18  ;;  %1919 = vst [vmem:[#allocation3 + $0x8] sm:$0xff] %v1880_v23   ;;  %v1875_v27 = vpack.c.bf16 %v476_v26, %v473_v19  ;;  %v2592_v18 = vpop.permute.xlu0 %773 }
  0xf8   :  { %v2044_v28 = vpop.f32.mrf.mxu0  ;;  %v2076_v29 = vpop.f32.mrf.mxu1  ;;  %vm808_vm5 = vcmp.eq.s32.totalorder %v2562_v10, %v2592_v18 }
  0xf9   :  { %1836 = vst [vmem:[#allocation2] sm:$0xff] %v1835_v25   ;;  %1876 = vst [vmem:[#allocation3] sm:$0xff] %v1875_v27   ;;  %v2594_v21 = vpop.permute.xlu1 %678 }
  0xfa   :  { %v248_v30 = vpop.f32.mrf.mxu0  ;;  %v489_v32 = vpop.f32.mrf.mxu1  ;;  %vm707_vm6 = vcmp.eq.s32.totalorder %v2562_v10, %v2594_v21  ;;  %vm1739_vm11 = vmpackc.low %vm809_vm4, %vm808_vm5 }
  0xfb   :  { %v2596_v22 = vpop.permute.xlu0 %675 }
  0xfc   :  { %v2045_v34 = vpop.f32.mrf.mxu0  ;;  %v2077_v36 = vpop.f32.mrf.mxu1  ;;  %vm706_vm7 = vcmp.eq.s32.totalorder %v2562_v10, %v2596_v22 }
  0xfd   :  { %v1850_v35 = vpack.c.bf16 %v2045_v34, %v2044_v28  ;;  %v1890_v37 = vpack.c.bf16 %v2077_v36, %v2076_v29  ;;  %v2598_v27 = vpop.permute.xlu1 %782 }
  0xfe   :  { %v251_v38 = vpop.f32.mrf.mxu0  ;;  %v492_v40 = vpop.f32.mrf.mxu1  ;;  %v2252_v36 = vld [vmem:[#allocation3 + $0x8] sm:$0xff]   ;;  %vm811_vm9 = vcmp.eq.s32.totalorder %v2562_v10, %v2598_v27 }
  0xff   :  { %1914 = vst [vmem:[#allocation2 + $0x18] sm:$0xff] %v1850_v35   ;;  %v1845_v39 = vpack.c.bf16 %v251_v38, %v248_v30  ;;  %1921 = vst [vmem:[#allocation3 + $0x18] sm:$0xff] %v1890_v37   ;;  %v1885_v41 = vpack.c.bf16 %v492_v40, %v489_v32  ;;  %v2600_v28 = vpop.permute.xlu0 %779  ;;  %v2253_v35 = vld [vmem:[#allocation2 + $0x8] sm:$0xff]  }
 0x100   :  { %v2048_v42 = vpop.f32.mrf.mxu0  ;;  %v2080_v44 = vpop.f32.mrf.mxu1  ;;  %v2255_v37 = vld [vmem:[#allocation2] sm:$0xff]   ;;  %vm810_vm10 = vcmp.eq.s32.totalorder %v2562_v10, %v2600_v28 }
 0x101   :  { %1913 = vst [vmem:[#allocation2 + $0x10] sm:$0xff] %v1845_v39   ;;  %1920 = vst [vmem:[#allocation3 + $0x10] sm:$0xff] %v1885_v41   ;;  %v2602_v32 = vpop.permute.xlu1 %684  ;;  %v2254_v38 = vld [vmem:[#allocation3] sm:$0xff]   ;;  %v2256_v41 = vld [vmem:[#allocation5 + $0x38] sm:$0xff]  }
 0x102   :  { %v264_v46 = vpop.f32.mrf.mxu0  ;;  %v505_v47 = vpop.f32.mrf.mxu1  ;;  %vm1741_vm13 = vmpackc.low %vm811_vm9, %vm810_vm10  ;;  %vm709_vm14 = vcmp.eq.s32.totalorder %v2562_v10, %v2602_v32 }
 0x103   :  { %v2604_v34 = vpop.permute.xlu0 %681 }
 0x104   :  { %v2049_v48 = vpop.f32.mrf.mxu0  ;;  %v2081_v50 = vpop.f32.mrf.mxu1 }
 0x105   :  { %v1860_v49 = vpack.c.bf16 %v2049_v48, %v2048_v42  ;;  %v1900_v51 = vpack.c.bf16 %v2081_v50, %v2080_v44  ;;  %v2606_v39 = vpop.permute.xlu1 %788 }
 0x106   :  { %v267_v52 = vpop.f32.mrf.mxu0  ;;  %v508_v55 = vpop.f32.mrf.mxu1  ;;  %v2249_v25 = vld [vmem:[#allocation2 + $0x18] sm:$0xff]  }
 0x107   :  { %1916 = vst [vmem:[#allocation2 + $0x28] sm:$0xff] %v1860_v49   ;;  %v1855_v54 = vpack.c.bf16 %v267_v52, %v264_v46  ;;  %1923 = vst [vmem:[#allocation3 + $0x28] sm:$0xff] %v1900_v51   ;;  %v1895_v57 = vpack.c.bf16 %v508_v55, %v505_v47  ;;  %v2248_v26 = vld [vmem:[#allocation3 + $0x18] sm:$0xff]   ;;  %v2608_v40 = vpop.permute.xlu0 %785  ;;  %v2259_v46 = vld [vmem:[#allocation5 + $0x20] sm:$0xff]  }
 0x108   :  { %v2052_v58 = vpop.f32.mrf.mxu0  ;;  %v2084_v59 = vpop.f32.mrf.mxu1  ;;  %v2251_v29 = vld [vmem:[#allocation2 + $0x10] sm:$0xff]   ;;  %v2260_v51 = vld [vmem:[#allocation5 + $0x18] sm:$0xff]  }
 0x109   :  { %1915 = vst [vmem:[#allocation2 + $0x20] sm:$0xff] %v1855_v54   ;;  %1922 = vst [vmem:[#allocation3 + $0x20] sm:$0xff] %v1895_v57   ;;  %v2250_v30 = vld [vmem:[#allocation3 + $0x10] sm:$0xff]   ;;  %v691_v33 = vpop.permute.xlu1 %690  ;;  %v2263_v54 = vld [vmem:[#allocation5] sm:$0xff]  }
 0x10a   :  { %v280_v60 = vpop.f32.mrf.mxu0  ;;  %v521_v61 = vpop.f32.mrf.mxu1  ;;  %vm711_vm2 = vcmp.eq.s32.totalorder %v2562_v10, %v691_v33  ;;  %v2261_v52 = vld [vmem:[#allocation5 + $0x10] sm:$0xff]  }
 0x10b   :  { %v688_v42 = vpop.permute.xlu0 %687 }
 0x10c   :  { %v2053_v62 = vpop.f32.mrf.mxu0  ;;  %v2085_v1 = vpop.f32.mrf.mxu1  ;;  %vm710_vm3 = vcmp.eq.s32.totalorder %v2562_v10, %v688_v42 }
 0x10d   :  { %v1870_v0 = vpack.c.bf16 %v2053_v62, %v2052_v58  ;;  %v1910_v3 = vpack.c.bf16 %v2085_v1, %v2084_v59  ;;  %v795_v44 = vpop.permute.xlu1 %794  ;;  %v2675_v62 = vld [vmem:[%s2759_s6] ss:$0 sm:$0xff] }
 0x10e   :  { %v283_v4 = vpop.f32.mrf.mxu0  ;;  %v524_v6 = vpop.f32.mrf.mxu1  ;;  %v2245_v19 = vld [vmem:[#allocation2 + $0x28] sm:$0xff]   ;;  %vm815_vm5 = vcmp.eq.s32.totalorder %v2562_v10, %v795_v44 }
 0x10f   :  { %1918 = vst [vmem:[#allocation2 + $0x38] sm:$0xff] %v1870_v0   ;;  %v1865_v5 = vpack.c.bf16 %v283_v4, %v280_v60  ;;  %1925 = vst [vmem:[#allocation3 + $0x38] sm:$0xff] %v1910_v3   ;;  %v1905_v7 = vpack.c.bf16 %v524_v6, %v521_v61  ;;  %v2244_v20 = vld [vmem:[#allocation3 + $0x28] sm:$0xff]   ;;  %v792_v45 = vpop.permute.xlu0 %791 }
 0x110   :  { %v2247_v23 = vld [vmem:[#allocation2 + $0x20] sm:$0xff]  }
 0x111   :  { %1917 = vst [vmem:[#allocation2 + $0x30] sm:$0xff] %v1865_v5   ;;  %1924 = vst [vmem:[#allocation3 + $0x30] sm:$0xff] %v1905_v7   ;;  %v2246_v24 = vld [vmem:[#allocation3 + $0x20] sm:$0xff]   ;;  %v697_v47 = vpop.permute.xlu1 %696 }
 0x112   :  { %vm713_vm10 = vcmp.eq.s32.totalorder %v2562_v10, %v697_v47 }
 0x113   :  { %v694_v48 = vpop.permute.xlu0 %693 }
 0x115   :  { %v801_v49 = vpop.permute.xlu1 %800 }
 0x116   :  { %v2241_v12 = vld [vmem:[#allocation2 + $0x38] sm:$0xff]  }
 0x117   :  { %v2240_v13 = vld [vmem:[#allocation3 + $0x38] sm:$0xff]   ;;  %2118 = vmatprep.subr.bf16.mxu1 %v2241_v12  ;;  %v798_v50 = vpop.permute.xlu0 %797 }
 0x118   :  { %v2243_v14 = vld [vmem:[#allocation2 + $0x30] sm:$0xff]   ;;  %2086 = vmatprep.subr.bf16.mxu0 %v2240_v13  ;;  %2119 = vmatpush3.bf16.msra.mxu1 %v2241_v12 }
 0x119   :  { %v2242_v16 = vld [vmem:[#allocation3 + $0x30] sm:$0xff]   ;;  %2087 = vmatpush3.bf16.msra.mxu0 %v2240_v13  ;;  %2120 = vmatprep.subr.bf16.mxu1 %v2243_v14 }
 0x11a   :  { %2088 = vmatprep.subr.bf16.mxu0 %v2242_v16 }
 0x11c   :  { %2121 = vmatpush3.bf16.msra.mxu1 %v2243_v14 }
 0x11d   :  { %2089 = vmatpush3.bf16.msra.mxu0 %v2242_v16  ;;  %2122 = vmatprep.subr.bf16.mxu1 %v2245_v19 }
 0x11e   :  { %2090 = vmatprep.subr.bf16.mxu0 %v2244_v20 }
 0x120   :  { %2123 = vmatpush3.bf16.msra.mxu1 %v2245_v19 }
 0x121   :  { %2091 = vmatpush3.bf16.msra.mxu0 %v2244_v20  ;;  %2124 = vmatprep.subr.bf16.mxu1 %v2247_v23 }
 0x122   :  { %2092 = vmatprep.subr.bf16.mxu0 %v2246_v24 }
 0x124   :  { %2125 = vmatpush3.bf16.msra.mxu1 %v2247_v23 }
 0x125   :  { %2093 = vmatpush3.bf16.msra.mxu0 %v2246_v24  ;;  %2126 = vmatprep.subr.bf16.mxu1 %v2249_v25 }
 0x126   :  { %2094 = vmatprep.subr.bf16.mxu0 %v2248_v26 }
 0x128   :  { %2127 = vmatpush3.bf16.msra.mxu1 %v2249_v25 }
 0x129   :  { %2095 = vmatpush3.bf16.msra.mxu0 %v2248_v26  ;;  %2128 = vmatprep.subr.bf16.mxu1 %v2251_v29 }
 0x12a   :  { %2096 = vmatprep.subr.bf16.mxu0 %v2250_v30 }
 0x12c   :  { %2129 = vmatpush3.bf16.msra.mxu1 %v2251_v29 }
 0x12d   :  { %2097 = vmatpush3.bf16.msra.mxu0 %v2250_v30  ;;  %2130 = vmatprep.subr.bf16.mxu1 %v2253_v35 }
 0x12e   :  { %2098 = vmatprep.subr.bf16.mxu0 %v2252_v36 }
 0x130   :  { %2131 = vmatpush3.bf16.msra.mxu1 %v2253_v35 }
 0x131   :  { %2099 = vmatpush3.bf16.msra.mxu0 %v2252_v36  ;;  %2132 = vmatprep.subr.bf16.mxu1 %v2255_v37 }
 0x132   :  { %2100 = vmatprep.subr.bf16.mxu0 %v2254_v38 }
 0x134   :  { %2133 = vmatpush3.bf16.msra.mxu1 %v2255_v37 }
 0x135   :  { %2101 = vmatpush3.bf16.msra.mxu0 %v2254_v38 }
 0x136   :  { %2150 = vmatprep.subr.bf16.mxu0 %v2256_v41 }
 0x137   :  { %2135 = vmatmul.mubr.msk.bf16.vlgmr.msra.gmra.mxu1 %vm1759_vm12, %v2312_v15  ;;  %vm1765_vm12 = vmpackc.low %vm707_vm6, %vm706_vm7  ;;  %vm814_vm6 = vcmp.eq.s32.totalorder %v2562_v10, %v792_v45 }
 0x138   :  { %2103 = vmatmul.mubr.msk.bf16.vlgmr.msra.gmra.mxu0 %vm1735_vm15, %v2312_v15  ;;  %2138 = vmatprep.mubr.msk.bf16.mxu1 %vm1761_vm0, %v2312_v15  ;;  %vm708_vm15 = vcmp.eq.s32.totalorder %v2562_v10, %v2604_v34  ;;  %vm813_vm0 = vcmp.eq.s32.totalorder %v2562_v10, %v2606_v39  ;;  %vm1745_vm9 = vmpackc.low %vm815_vm5, %vm814_vm6 }
 0x139   :  { %2106 = vmatprep.mubr.msk.bf16.mxu0 %vm1737_vm1, %v2312_v15  ;;  %2151 = vmatpush3.bf16.msra.mxu0 %v2256_v41  ;;  %vm812_vm1 = vcmp.eq.s32.totalorder %v2562_v10, %v2608_v40  ;;  %vm1767_vm4 = vmpackc.low %vm709_vm14, %vm708_vm15 }
 0x13a   :  { %2152 = vmatprep.subr.bf16.mxu0 %v2257_v31  ;;  %vm1743_vm7 = vmpackc.low %vm813_vm0, %vm812_vm1 }
 0x13d   :  { %2153 = vmatpush3.bf16.msra.mxu0 %v2257_v31 }
 0x13e   :  { %2154 = vmatprep.subr.bf16.mxu0 %v2258_v43 }
 0x13f   :  { %2139 = vmatmul.mubr.msk.bf16.gmra.mxu1 %vm1763_vm8, %v2312_v15  ;;  %vm1769_vm8 = vmpackc.low %vm711_vm2, %vm710_vm3 }
 0x140   :  { %2107 = vmatmul.mubr.msk.bf16.gmra.mxu0 %vm1739_vm11, %v2312_v15  ;;  %2142 = vmatprep.mubr.msk.bf16.mxu1 %vm1765_vm12, %v2312_v15  ;;  %vm712_vm11 = vcmp.eq.s32.totalorder %v2562_v10, %v694_v48  ;;  %vm817_vm12 = vcmp.eq.s32.totalorder %v2562_v10, %v801_v49 }
 0x141   :  { %2110 = vmatprep.mubr.msk.bf16.mxu0 %vm1741_vm13, %v2312_v15  ;;  %2155 = vmatpush3.bf16.msra.mxu0 %v2258_v43  ;;  %vm816_vm13 = vcmp.eq.s32.totalorder %v2562_v10, %v798_v50  ;;  %vm1771_vm14 = vmpackc.low %vm713_vm10, %vm712_vm11 }
 0x142   :  { %2156 = vmatprep.subr.bf16.mxu0 %v2259_v46  ;;  %vm1747_vm15 = vmpackc.low %vm817_vm12, %vm816_vm13 }
 0x145   :  { %2157 = vmatpush3.bf16.msra.mxu0 %v2259_v46 }
 0x146   :  { %2158 = vmatprep.subr.bf16.mxu0 %v2260_v51 }
 0x147   :  { %2143 = vmatmul.mubr.msk.bf16.gmra.mxu1 %vm1767_vm4, %v2312_v15 }
 0x148   :  { %2111 = vmatmul.mubr.msk.bf16.gmra.mxu0 %vm1743_vm7, %v2312_v15  ;;  %2146 = vmatprep.mubr.msk.bf16.mxu1 %vm1769_vm8, %v2312_v15 }
 0x149   :  { %2114 = vmatprep.mubr.msk.bf16.mxu0 %vm1745_vm9, %v2312_v15  ;;  %2159 = vmatpush3.bf16.msra.mxu0 %v2260_v51 }
 0x14a   :  { %2160 = vmatprep.subr.bf16.mxu0 %v2261_v52 }
 0x14d   :  { %2161 = vmatpush3.bf16.msra.mxu0 %v2261_v52 }
 0x14e   :  { %2162 = vmatprep.subr.bf16.mxu0 %v2262_v53 }
 0x14f   :  { %2147 = vmatmul.mubr.msk.bf16.gmra.mxu1 %vm1771_vm14, %v2312_v15 }
 0x150   :  { %2115 = vmatmul.mubr.msk.bf16.gmra.mxu0 %vm1747_vm15, %v2312_v15 }
 0x151   :  { %2163 = vmatpush3.bf16.msra.mxu0 %v2262_v53 }
 0x152   :  { %2164 = vmatprep.subr.bf16.mxu0 %v2263_v54 }
 0x155   :  { %2165 = vmatpush3.bf16.msra.mxu0 %v2263_v54 }
 0x1f7   :  { %v2136_v55 = vpop.f32.mrf.mxu1 }
 0x1f8   :  { %v2104_v10 = vpop.f32.mrf.mxu0 }
 0x1f9   :  { %v1101_v56 = vpop.f32.mrf.mxu1  ;;  %v1110_v60 = vadd.f32 %v2136_v55, %v2104_v10 }
 0x1fa   :  { %v956_v57 = vpop.f32.mrf.mxu0 }
 0x1fb   :  { %v1102_v58 = vadd.f32 %v1101_v56, %v956_v57  ;;  %v2137_v59 = vpop.f32.mrf.mxu1  ;;  %v1173_v6 = vadd.f32 %v2675_v62, %v1110_v60 }
 0x1fc   :  { %v2105_v61 = vpop.f32.mrf.mxu0 }
 0x1fd   :  { %v1113_v63 = vadd.f32 %v2137_v59, %v2105_v61  ;;  %v1104_v0 = vpop.f32.mrf.mxu1  ;;  %v1171_v2 = vadd.f32 %v2675_v62, %v1102_v58  ;;  %v1189_v19 = vmax.f32 %v1173_v6, 0.0 }
 0x1fe   :  { %v959_v1 = vpop.f32.mrf.mxu0 }
 0x1ff   :  { %v1174_v3 = vadd.f32 %v2675_v62, %v1113_v63  ;;  %v1105_v4 = vadd.f32 %v1104_v0, %v959_v1  ;;  %v2140_v5 = vpop.f32.mrf.mxu1  ;;  %v1187_v14 = vmax.f32 %v1171_v2, 0.0 }
 0x200   :  { %v2108_v7 = vpop.f32.mrf.mxu0 }
 0x201   :  { %v1172_v8 = vadd.f32 %v2675_v62, %v1105_v4  ;;  %v1117_v11 = vpop.f32.mrf.mxu1  ;;  %v1190_v12 = vmax.f32 %v1174_v3, 0.0  ;;  %v1126_v20 = vadd.f32 %v2140_v5, %v2108_v7 }
 0x202   :  { %v972_v13 = vpop.f32.mrf.mxu0 }
 0x203   :  { %v1188_v16 = vmax.f32 %v1172_v8, 0.0  ;;  %v1118_v17 = vadd.f32 %v1117_v11, %v972_v13  ;;  %v2141_v18 = vpop.f32.mrf.mxu1  ;;  %v1204_v25 = vpack.c.bf16 %v1190_v12, %v1189_v19  ;;  %v1177_v32 = vadd.f32 %v2675_v62, %v1126_v20 }
 0x204   :  { %v2109_v21 = vpop.f32.mrf.mxu0 }
 0x205   :  { %v1129_v22 = vadd.f32 %v2141_v18, %v2109_v21  ;;  %v1120_v23 = vpop.f32.mrf.mxu1  ;;  %v1203_v24 = vpack.c.bf16 %v1188_v16, %v1187_v14  ;;  %v1175_v27 = vadd.f32 %v2675_v62, %v1118_v17  ;;  %v1193_v33 = vmax.f32 %v1177_v32, 0.0 }
 0x206   :  { %v975_v26 = vpop.f32.mrf.mxu0  ;;  %v1396_v21 = vshrl.u32 %v632_v9, 7 }
 0x207   :  { %v1178_v28 = vadd.f32 %v2675_v62, %v1129_v22  ;;  %v1121_v29 = vadd.f32 %v1120_v23, %v975_v26  ;;  %2166 = vmatprep.mubr.bf16.mxu0 %v1203_v24  ;;  %v2144_v30 = vpop.f32.mrf.mxu1  ;;  %v1191_v39 = vmax.f32 %v1175_v27, 0.0  ;;  %v1783_v23 = vld [vmem:[%s2755_s2] ss:$0 sm:$0xff] }
 0x208   :  { %v2112_v34 = vpop.f32.mrf.mxu0  ;;  %2167 = vmatmul.mubr.bf16.vlgmr.msra.gmra.mxu0 %v1204_v25  ;;  %v1397_v22 = vadd.s32 8, %v1396_v21  ;;  %v1398_v24 = vadd.s32 16, %v1396_v21  ;;  %v1399_v25 = vadd.s32 24, %v1396_v21  ;;  %vm1417_vm0 = vcmp.eq.s32.totalorder %v1396_v21, %v1783_v23 }
 0x209   :  { %v1176_v35 = vadd.f32 %v2675_v62, %v1121_v29  ;;  %v1133_v36 = vpop.f32.mrf.mxu1  ;;  %v1194_v37 = vmax.f32 %v1178_v28, 0.0  ;;  %v1142_v42 = vadd.f32 %v2144_v30, %v2112_v34  ;;  %v1400_v26 = vadd.s32 32, %v1396_v21 }
 0x20a   :  { %v988_v38 = vpop.f32.mrf.mxu0  ;;  %vm1418_vm1 = vcmp.eq.s32.totalorder %v1397_v22, %v1783_v23  ;;  %vm1419_vm3 = vcmp.eq.s32.totalorder %v1398_v24, %v1783_v23  ;;  %vm1420_vm4 = vcmp.eq.s32.totalorder %v1399_v25, %v1783_v23  ;;  %v1401_v9 = vadd.s32 40, %v1396_v21 }
 0x20b   :  { %v1192_v40 = vmax.f32 %v1176_v35, 0.0  ;;  %v1134_v41 = vadd.f32 %v1133_v36, %v988_v38  ;;  %v2145_v31 = vpop.f32.mrf.mxu1  ;;  %v1206_v48 = vpack.c.bf16 %v1194_v37, %v1193_v33  ;;  %v1181_v53 = vadd.f32 %v2675_v62, %v1142_v42  ;;  %vm1784_vm2 = vmpackc.low %vm1418_vm1, %vm1417_vm0 }
 0x20c   :  { %v2113_v43 = vpop.f32.mrf.mxu0  ;;  %2198 = vmatprep.mubr.msk.bf16.mxu1 %vm1784_vm2, %v2312_v15  ;;  %vm2698_vm5 = vmpackc.low %vm1420_vm4, %vm1419_vm3  ;;  %v1402_v27 = vadd.s32 48, %v1396_v21  ;;  %v1403_v28 = vadd.s32 56, %v1396_v21  ;;  %vm1421_vm6 = vcmp.eq.s32.totalorder %v1400_v26, %v1783_v23  ;;  %vm1422_vm7 = vcmp.eq.s32.totalorder %v1401_v9, %v1783_v23 }
 0x20d   :  { %v1145_v44 = vadd.f32 %v2145_v31, %v2113_v43  ;;  %v1136_v45 = vpop.f32.mrf.mxu1  ;;  %v1205_v46 = vpack.c.bf16 %v1192_v40, %v1191_v39  ;;  %v1179_v49 = vadd.f32 %v2675_v62, %v1134_v41  ;;  %v1197_v63 = vmax.f32 %v1181_v53, 0.0  ;;  %vm2702_vm8 = vmpackc.low %vm1422_vm7, %vm1421_vm6 }
 0x20e   :  { %v991_v47 = vpop.f32.mrf.mxu0  ;;  %vm1423_vm9 = vcmp.eq.s32.totalorder %v1402_v27, %v1783_v23  ;;  %vm1424_vm10 = vcmp.eq.s32.totalorder %v1403_v28, %v1783_v23  ;;  %v1404_v32 = vadd.s32 64, %v1396_v21  ;;  %v1405_v34 = vadd.s32 72, %v1396_v21 }
 0x20f   :  { %v1182_v50 = vadd.f32 %v2675_v62, %v1145_v44  ;;  %v1137_v51 = vadd.f32 %v1136_v45, %v991_v47  ;;  %2170 = vmatprep.mubr.bf16.mxu0 %v1205_v46  ;;  %v2148_v52 = vpop.f32.mrf.mxu1  ;;  %v1195_v58 = vmax.f32 %v1179_v49, 0.0  ;;  %vm2706_vm11 = vmpackc.low %vm1424_vm10, %vm1423_vm9  ;;  %v1406_v35 = vadd.s32 80, %v1396_v21 }
 0x210   :  { %v2116_v54 = vpop.f32.mrf.mxu0  ;;  %2171 = vmatmul.mubr.bf16.gmra.mxu0 %v1206_v48  ;;  %v1407_v36 = vadd.s32 88, %v1396_v21  ;;  %vm1425_vm12 = vcmp.eq.s32.totalorder %v1404_v32, %v1783_v23  ;;  %vm1426_vm13 = vcmp.eq.s32.totalorder %v1405_v34, %v1783_v23  ;;  %v1408_v39 = vadd.s32 96, %v1396_v21 }
 0x211   :  { %v1180_v55 = vadd.f32 %v2675_v62, %v1137_v51  ;;  %v1149_v10 = vpop.f32.mrf.mxu1  ;;  %v1198_v56 = vmax.f32 %v1182_v50, 0.0  ;;  %v1158_v0 = vadd.f32 %v2148_v52, %v2116_v54  ;;  %vm2710_vm14 = vmpackc.low %vm1426_vm13, %vm1425_vm12  ;;  %vm1427_vm15 = vcmp.eq.s32.totalorder %v1406_v35, %v1783_v23 }
 0x212   :  { %v1004_v57 = vpop.f32.mrf.mxu0  ;;  %vm1428_vm0 = vcmp.eq.s32.totalorder %v1407_v36, %v1783_v23  ;;  %v1409_v40 = vadd.s32 104, %v1396_v21  ;;  %v1410_v41 = vadd.s32 112, %v1396_v21  ;;  %v1411_v31 = vadd.s32 120, %v1396_v21 }
 0x213   :  { %v1196_v59 = vmax.f32 %v1180_v55, 0.0  ;;  %v1150_v60 = vadd.f32 %v1149_v10, %v1004_v57  ;;  %v2149_v61 = vpop.f32.mrf.mxu1  ;;  %v1208_v6 = vpack.c.bf16 %v1198_v56, %v1197_v63  ;;  %v1185_v12 = vadd.f32 %v2675_v62, %v1158_v0  ;;  %vm2714_vm1 = vmpackc.low %vm1428_vm0, %vm1427_vm15  ;;  %v1774_v10 = vld [vmem:[%s2761_s8] ss:$0 sm:$0xff]  ;;  %s2313_s8 = smov [#allocation8]  }
 0x214   :  { %v2117_v1 = vpop.f32.mrf.mxu0  ;;  %vm1429_vm2 = vcmp.eq.s32.totalorder %v1408_v39, %v1783_v23  ;;  %vm1430_vm3 = vcmp.eq.s32.totalorder %v1409_v40, %v1783_v23  ;;  %vm1431_vm6 = vcmp.eq.s32.totalorder %v1410_v41, %v1783_v23  ;;  %vm1432_vm7 = vcmp.eq.s32.totalorder %v1411_v31, %v1783_v23  ;;  %s1650_s25 = sshll.u32 %s2313_s8, 4  ;;  %s1651_s25 = int_to_ptr.vmem [resolvable:$true] %s1650_s25 }
 0x215   :  { %v1161_v2 = vadd.f32 %v2149_v61, %v2117_v1  ;;  %v1152_v3 = vpop.f32.mrf.mxu1  ;;  %v1207_v4 = vpack.c.bf16 %v1196_v59, %v1195_v58  ;;  %v1183_v7 = vadd.f32 %v2675_v62, %v1150_v60  ;;  %v1201_v18 = vmax.f32 %v1185_v12, 0.0  ;;  %vm2718_vm4 = vmpackc.low %vm1430_vm3, %vm1429_vm2  ;;  %s2284_s26 = scalar_lea.vmem %s1651_s25, 2048  ;;  %p2289_p6 = scmp.lt.s32.totalorder %s1651_s25, %s1651_s25 }
 0x216   :  { %v1007_v5 = vpop.f32.mrf.mxu0  ;;  %vm2722_vm9 = vmpackc.low %vm1432_vm7, %vm1431_vm6  ;;  %p2285_p5 = scmp.ne.s32.totalorder %s1651_s25, %s2284_s26  ;;  %p2290_p7 = scmp.lt.s32.totalorder %s2284_s26, %s2284_s26 }
 0x217   :  { %v1186_v8 = vadd.f32 %v2675_v62, %v1161_v2  ;;  %v1153_v11 = vadd.f32 %v1152_v3, %v1007_v5  ;;  %2174 = vmatprep.mubr.bf16.mxu0 %v1207_v4  ;;  %v1199_v16 = vmax.f32 %v1183_v7, 0.0 }
 0x218   :  { %2175 = vmatmul.mubr.bf16.gmra.mxu0 %v1208_v6  ;;  %p2291_p8 = por %p2290_p7, %p2289_p6 }
 0x219   :  { %v1184_v13 = vadd.f32 %v2675_v62, %v1153_v11  ;;  %v1202_v14 = vmax.f32 %v1186_v8, 0.0 }
 0x21a   :  { %p2292_p9 = pnand %p2291_p8, %p2285_p5 }
 0x21b   :  { %v1200_v17 = vmax.f32 %v1184_v13, 0.0  ;;  %v1210_v20 = vpack.c.bf16 %v1202_v14, %v1201_v18 }
 0x21d   :  { %v1209_v19 = vpack.c.bf16 %v1200_v17, %v1199_v16 }
 0x21f   :  { %2178 = vmatprep.mubr.bf16.mxu0 %v1209_v19 }
 0x220   :  { %2179 = vmatmul.mubr.bf16.gmra.mxu0 %v1210_v20 }
 0x2c8   :  { %v2168_v43 = vpop.f32.mrf.mxu0 }
 0x2c9   :  { %v1325_v27 = vadd.f32 %v2168_v43, %v1774_v10 }
 0x2ca   :  { %v1316_v44 = vpop.f32.mrf.mxu0 }
 0x2cb   :  { %v1381_v36 = vmax.f32 %v1325_v27, 0.0  ;;  %v1317_v39 = vadd.f32 %v1774_v10, %v1316_v44 }
 0x2cc   :  { %v2169_v45 = vpop.f32.mrf.mxu0 }
 0x2cd   :  { %v1328_v25 = vadd.f32 %v2169_v45, %v1774_v10  ;;  %v1379_v31 = vmax.f32 %v1317_v39, 0.0 }
 0x2ce   :  { %v1319_v46 = vpop.f32.mrf.mxu0 }
 0x2cf   :  { %v1382_v32 = vmax.f32 %v1328_v25, 0.0  ;;  %v1320_v34 = vadd.f32 %v1774_v10, %v1319_v46 }
 0x2d0   :  { %v2172_v47 = vpop.f32.mrf.mxu0 }
 0x2d1   :  { %v1341_v18 = vadd.f32 %v2172_v47, %v1774_v10  ;;  %v1474_v40 = vpack.c.bf16 %v1382_v32, %v1381_v36  ;;  %v1380_v41 = vmax.f32 %v1320_v34, 0.0 }
 0x2d2   :  { %v1332_v48 = vpop.f32.mrf.mxu0 }
 0x2d3   :  { %v1385_v23 = vmax.f32 %v1341_v18, 0.0  ;;  %v1333_v24 = vadd.f32 %v1774_v10, %v1332_v48  ;;  %v1473_v47 = vpack.c.bf16 %v1380_v41, %v1379_v31 }
 0x2d4   :  { %v2173_v49 = vpop.f32.mrf.mxu0 }
 0x2d5   :  { %v1344_v14 = vadd.f32 %v2173_v49, %v1774_v10  ;;  %v1383_v28 = vmax.f32 %v1333_v24, 0.0 }
 0x2d6   :  { %v1335_v50 = vpop.f32.mrf.mxu0 }
 0x2d7   :  { %v1386_v20 = vmax.f32 %v1344_v14, 0.0  ;;  %v1336_v21 = vadd.f32 %v1774_v10, %v1335_v50 }
 0x2d8   :  { %v2176_v51 = vpop.f32.mrf.mxu0 }
 0x2d9   :  { %v1357_v3 = vadd.f32 %v2176_v51, %v1774_v10  ;;  %v1476_v26 = vpack.c.bf16 %v1386_v20, %v1385_v23  ;;  %v1384_v9 = vmax.f32 %v1336_v21, 0.0 }
 0x2da   :  { %v1348_v52 = vpop.f32.mrf.mxu0 }
 0x2db   :  { %v1389_v12 = vmax.f32 %v1357_v3, 0.0  ;;  %v1349_v13 = vadd.f32 %v1774_v10, %v1348_v52  ;;  %v1475_v35 = vpack.c.bf16 %v1384_v9, %v1383_v28 }
 0x2dc   :  { %v2177_v53 = vpop.f32.mrf.mxu0 }
 0x2dd   :  { %v1360_v63 = vadd.f32 %v2177_v53, %v1774_v10  ;;  %v1387_v19 = vmax.f32 %v1349_v13, 0.0 }
 0x2de   :  { %v1351_v54 = vpop.f32.mrf.mxu0 }
 0x2df   :  { %v1390_v7 = vmax.f32 %v1360_v63, 0.0  ;;  %v1352_v8 = vadd.f32 %v1774_v10, %v1351_v54 }
 0x2e0   :  { %v2180_v55 = vpop.f32.mrf.mxu0 }
 0x2e1   :  { %v1373_v57 = vadd.f32 %v2180_v55, %v1774_v10  ;;  %v1478_v16 = vpack.c.bf16 %v1390_v7, %v1389_v12  ;;  %v1388_v17 = vmax.f32 %v1352_v8, 0.0 }
 0x2e2   :  { %v1364_v56 = vpop.f32.mrf.mxu0 }
 0x2e3   :  { %v1365_v59 = vadd.f32 %v1774_v10, %v1364_v56  ;;  %v1393_v0 = vmax.f32 %v1373_v57, 0.0  ;;  %v1477_v22 = vpack.c.bf16 %v1388_v17, %v1387_v19 }
 0x2e4   :  { %v2181_v58 = vpop.f32.mrf.mxu0 }
 0x2e5   :  { %v1376_v60 = vadd.f32 %v2181_v58, %v1774_v10  ;;  %v1391_v4 = vmax.f32 %v1365_v59, 0.0 }
 0x2e6   :  { %v1367_v61 = vpop.f32.mrf.mxu0 }
 0x2e7   :  { %v1394_v1 = vmax.f32 %v1376_v60, 0.0  ;;  %v1368_v2 = vadd.f32 %v1774_v10, %v1367_v61 }
 0x2e9   :  { %v1480_v5 = vpack.c.bf16 %v1394_v1, %v1393_v0  ;;  %v1392_v6 = vmax.f32 %v1368_v2, 0.0 }
 0x2eb   :  { %v1479_v11 = vpack.c.bf16 %v1392_v6, %v1391_v4  ;;  %2182 = vmatprep.subr.bf16.mxu1 %v1480_v5 }
 0x2ec   :  { %2183 = vmatpush3.bf16.msra.mxu1 %v1480_v5 }
 0x2ed   :  { %2184 = vmatprep.subr.bf16.mxu1 %v1479_v11 }
 0x2f0   :  { %2185 = vmatpush3.bf16.msra.mxu1 %v1479_v11 }
 0x2f1   :  { %2186 = vmatprep.subr.bf16.mxu1 %v1478_v16 }
 0x2f4   :  { %2187 = vmatpush3.bf16.msra.mxu1 %v1478_v16 }
 0x2f5   :  { %2188 = vmatprep.subr.bf16.mxu1 %v1477_v22 }
 0x2f8   :  { %2189 = vmatpush3.bf16.msra.mxu1 %v1477_v22 }
 0x2f9   :  { %2190 = vmatprep.subr.bf16.mxu1 %v1476_v26 }
 0x2fc   :  { %2191 = vmatpush3.bf16.msra.mxu1 %v1476_v26 }
 0x2fd   :  { %2192 = vmatprep.subr.bf16.mxu1 %v1475_v35 }
 0x300   :  { %2193 = vmatpush3.bf16.msra.mxu1 %v1475_v35 }
 0x301   :  { %2194 = vmatprep.subr.bf16.mxu1 %v1474_v40 }
 0x304   :  { %2195 = vmatpush3.bf16.msra.mxu1 %v1474_v40 }
 0x305   :  { %2196 = vmatprep.subr.bf16.mxu1 %v1473_v47 }
 0x308   :  { %2197 = vmatpush3.bf16.msra.mxu1 %v1473_v47 }
 0x30b   :  { %2199 = vmatmul.mubr.msk.bf16.vlgmr.msra.gmra.mxu1 %vm2698_vm5, %v2312_v15 }
 0x30c   :  { %2202 = vmatprep.mubr.msk.bf16.mxu1 %vm2702_vm8, %v2312_v15 }
 0x313   :  { %2203 = vmatmul.mubr.msk.bf16.gmra.mxu1 %vm2706_vm11, %v2312_v15 }
 0x314   :  { %2206 = vmatprep.mubr.msk.bf16.mxu1 %vm2710_vm14, %v2312_v15 }
 0x31b   :  { %2207 = vmatmul.mubr.msk.bf16.gmra.mxu1 %vm2714_vm1, %v2312_v15 }
 0x31c   :  { %2210 = vmatprep.mubr.msk.bf16.mxu1 %vm2718_vm4, %v2312_v15 }
 0x323   :  { %2211 = vmatmul.mubr.msk.bf16.gmra.mxu1 %vm2722_vm9, %v2312_v15 }
 0x3cb   :  { %v2200_v62 = vpop.f32.mrf.mxu1 }
 0x3cc   :  { %1631 = vst [vmem:[#allocation8 + $0x10] sm:$0xff] %v2200_v62 }
 0x3cd   :  { %v1515_v29 = vpop.f32.mrf.mxu1 }
 0x3ce   :  { %1629 = vst [vmem:[#allocation8] sm:$0xff] %v1515_v29 }
 0x3cf   :  { %v2201_v30 = vpop.f32.mrf.mxu1 }
 0x3d0   :  { %1632 = vst [vmem:[#allocation8 + $0x18] sm:$0xff] %v2201_v30 }
 0x3d1   :  { %v1518_v37 = vpop.f32.mrf.mxu1 }
 0x3d2   :  { %1630 = vst [vmem:[#allocation8 + $0x8] sm:$0xff] %v1518_v37 }
 0x3d3   :  { %v2204_v43 = vpop.f32.mrf.mxu1 }
 0x3d4   :  { %1635 = vst [vmem:[#allocation8 + $0x30] sm:$0xff] %v2204_v43 }
 0x3d5   :  { %v1531_v38 = vpop.f32.mrf.mxu1 }
 0x3d6   :  { %1633 = vst [vmem:[#allocation8 + $0x20] sm:$0xff] %v1531_v38 }
 0x3d7   :  { %v2205_v44 = vpop.f32.mrf.mxu1 }
 0x3d8   :  { %1636 = vst [vmem:[#allocation8 + $0x38] sm:$0xff] %v2205_v44 }
 0x3d9   :  { %v1534_v33 = vpop.f32.mrf.mxu1 }
 0x3da   :  { %1634 = vst [vmem:[#allocation8 + $0x28] sm:$0xff] %v1534_v33 }
 0x3db   :  { %v2208_v45 = vpop.f32.mrf.mxu1 }
 0x3dc   :  { %1639 = vst [vmem:[#allocation8 + $0x50] sm:$0xff] %v2208_v45 }
 0x3dd   :  { %v1547_v42 = vpop.f32.mrf.mxu1 }
 0x3de   :  { %1637 = vst [vmem:[#allocation8 + $0x40] sm:$0xff] %v1547_v42 }
 0x3df   :  { %v2209_v15 = vpop.f32.mrf.mxu1 }
 0x3e0   :  { %1640 = vst [vmem:[#allocation8 + $0x58] sm:$0xff] %v2209_v15 }
 0x3e1   :  { %v1550_v46 = vpop.f32.mrf.mxu1 }
 0x3e2   :  { %1638 = vst [vmem:[#allocation8 + $0x48] sm:$0xff] %v1550_v46 }
 0x3e3   :  { %v2212_v48 = vpop.f32.mrf.mxu1 }
 0x3e4   :  { %1643 = vst [vmem:[#allocation8 + $0x70] sm:$0xff] %v2212_v48 }
 0x3e5   :  { %v1563_v49 = vpop.f32.mrf.mxu1 }
 0x3e6   :  { %1641 = vst [vmem:[#allocation8 + $0x60] sm:$0xff] %v1563_v49 }
 0x3e7   :  { %v2213_v50 = vpop.f32.mrf.mxu1 }
 0x3e8   :  { %1644 = vst [vmem:[#allocation8 + $0x78] sm:$0xff] %v2213_v50 }
 0x3e9   :  { %v1566_v51 = vpop.f32.mrf.mxu1 }
 0x3ea   :  { %1642 = vst [vmem:[#allocation8 + $0x68] sm:$0xff] %v1566_v51 }
 0x3eb   :  { %2295 = shalt.err (!%p2292_p9)
}
 0x3ec   :  { %s2314_s27 = smov 128   ;;  %s2315_s28 = smov 8  }
 0x3ed   :  { %1656 = dma.vmem_to_hbm [thread:$0]  %s1651_s25, 2048, %s2762_s9, [#allocation7], %s2314_s27, %s2314_s27, %s2315_s28  }
 0x3ee   :  { %2306 = dma.done.wait [#allocation7], 2048  }
 0x3ef   :  { %2307 = vsyncadd [#allocation7], 4294965248 }
 0x3f0   :  { %1660 = vsyncpa [#allocation6], 1 }
 0x3f1   :  { %1661 = vsyncpa [#allocation7], 1 }

</bundles_post_ra>
